<compile_context>
chip_gen: v6e
topology: v6e:2x2x1
jax: 0.10.0
libtpu: 0.0.40
codegen_flags: <defaults>
</compile_context>

<pallas_src>
import functools

import jax
import jax.numpy as jnp
from jax import lax
from jax.experimental import pallas as pl
from jax.experimental.pallas import tpu as pltpu

LANE = 128
SUBLANE = 8


def _round_up(x, m):
    return ((x + m - 1) // m) * m


def _cdiv(a, b):
    return (a + b - 1) // b


def _tpu_flavor():
    """Returns (device_kind lowercased, #TensorCores a 'parallel' grid axis can shard over)."""
    try:
        kind = jax.devices()[0].device_kind.lower()
    except Exception:
        return "", 1
    n_tc = 2 if ("v7" in kind or "v4" in kind or "v5p" in kind) else 1
    return kind, n_tc


def _default_act_dtype(kind):
    # v6e/v7x have bf16 VPU/EUP -> bf16 bias-add/tanh ~doubles EUP throughput and halves vreg
    # pressure of the [TB, 128] intermediates. v5e (and older) lack bf16 vector units -> f32.
    if "v6" in kind or "v7" in kind:
        return jnp.bfloat16
    return jnp.float32


def _ppg_fused_kernel(obs_ref, w1_ref, b1_ref, w2_ref, b2_ref, wh_ref, bh_ref,
                      *out_refs, action_dim, write_shared, act_dtype):
    """One batch tile: shared MLP + fused heads, everything VMEM/vreg resident."""
    if write_shared:
        shared_ref, heads_ref = out_refs
    else:
        (heads_ref,) = out_refs

    cdt = w1_ref.dtype  # MXU compute dtype for LHS operands (bf16 by default)

    # Layer 1: Linear + Tanh. f32 MXU accumulation; bias-add/tanh in act_dtype.
    obs = obs_ref[...].astype(cdt)
    h1 = jnp.dot(obs, w1_ref[...], preferred_element_type=jnp.float32)
    h1 = jnp.tanh((h1 + b1_ref[...]).astype(act_dtype))

    # Layer 2: Linear + Tanh  -> shared features (module.forward output).
    h2 = jnp.dot(h1.astype(cdt), w2_ref[...], preferred_element_type=jnp.float32)
    h2 = jnp.tanh((h2 + b2_ref[...]).astype(act_dtype))

    if write_shared:
        shared_ref[...] = h2.astype(shared_ref.dtype)

    # Fused heads: columns [0:action_dim] = tanh(policy_mean), then value, then aux_value.
    heads = jnp.dot(h2.astype(cdt), wh_ref[...], preferred_element_type=jnp.float32)
    heads = heads + bh_ref[...]
    # (1, HDP) column mask broadcast by jnp.where -> no [TB, HDP] iota + compare filler.
    col = lax.broadcasted_iota(jnp.int32, (1, heads.shape[1]), 1)
    tanh_cols = jnp.tanh(heads.astype(act_dtype))
    heads_ref[...] = jnp.where(col < action_dim, tanh_cols, heads).astype(heads_ref.dtype)


def ppg_forward_fused(obs, params, *, action_dim, include_shared=True, tile_b=2048,
                      weight_dtype=jnp.bfloat16, act_dtype=None,
                      shared_dtype=jnp.bfloat16, heads_dtype=jnp.float32):
    """obs: [B, obs_dim] f32.

    include_shared=True  -> (shared [B,H], tanh(policy_mean) [B,A], value [B], aux_value [B])
    include_shared=False -> (tanh(policy_mean) [B,A], value [B], aux_value [B])  (no shared
                             writeback; fast path for get_action_and_value / get_value).
    """
    (w1, b1, w2, b2, w_pm, b_pm, w_v, b_v, w_aux, b_aux) = params

    B, obs_dim = obs.shape
    hidden = w1.shape[1]
    HP = _round_up(hidden, LANE)               # lane-dense hidden width (keep at 128 multiple)
    n_heads = action_dim + 2                   # policy_mean | value | aux_value
    HDP = _round_up(n_heads, LANE)             # lane-dense head slab width

    kind, n_tc = _tpu_flavor()
    if act_dtype is None:
        act_dtype = _default_act_dtype(kind)

    # Batch tile: as large as feasible (mem-bound kernel, ~0.35us/grid-step overhead), but
    # guarantee >= n_tc tiles so the "parallel" axis can shard across TensorCores (v7x).
    B8 = _round_up(B, SUBLANE)
    TB = min(tile_b, B8)
    if n_tc > 1:
        TB = min(TB, _round_up(_cdiv(B8, n_tc), SUBLANE))
    TB = max(TB, SUBLANE)
    Bp = _round_up(B, TB)

    obs_p = obs.astype(jnp.float32)
    if Bp != B:
        obs_p = jnp.pad(obs_p, ((0, Bp - B), (0, 0)))

    def pad2(a, rows, cols):
        return jnp.pad(a, ((0, rows - a.shape[0]), (0, cols - a.shape[1])))

    # Zero-padding to 128-wide keeps semantics exact (tanh(0)=0, zero rows contribute nothing).
    w1_p = pad2(w1, obs_dim, HP).astype(weight_dtype)
    b1_p = pad2(b1.reshape(1, -1), 1, HP).astype(jnp.float32)
    w2_p = pad2(w2, HP, HP).astype(weight_dtype)
    b2_p = pad2(b2.reshape(1, -1), 1, HP).astype(jnp.float32)

    wh = jnp.concatenate([w_pm, w_v, w_aux], axis=1)                       # [H, A+2]
    bh = jnp.concatenate(
        [b_pm.reshape(1, -1), b_v.reshape(1, -1), b_aux.reshape(1, -1)], axis=1)
    wh_p = pad2(wh, HP, HDP).astype(weight_dtype)
    bh_p = pad2(bh, 1, HDP).astype(jnp.float32)

    grid = (Bp // TB,)
    wbytes = jnp.dtype(weight_dtype).itemsize
    flops = int(2 * Bp * (obs_dim * HP + HP * HP + HP * HDP))
    transcendentals = int(Bp * (2 * HP + HDP))
    out_bytes = Bp * HDP * jnp.dtype(heads_dtype).itemsize
    if include_shared:
        out_bytes += Bp * HP * jnp.dtype(shared_dtype).itemsize
    bytes_accessed = int(obs_p.size * 4
                         + (w1_p.size + w2_p.size + wh_p.size) * wbytes
                         + (b1_p.size + b2_p.size + bh_p.size) * 4
                         + out_bytes)

    def wspec(shape):  # weights/biases: same block every grid step -> DMA'd once, VMEM-resident
        return pl.BlockSpec(shape, lambda i: (0, 0))

    kernel = functools.partial(_ppg_fused_kernel, action_dim=action_dim,
                               write_shared=include_shared, act_dtype=act_dtype)

    out_specs = []
    out_shape = []
    if include_shared:
        out_specs.append(pl.BlockSpec((TB, HP), lambda i: (i, 0)))      # shared (lane-dense)
        out_shape.append(jax.ShapeDtypeStruct((Bp, HP), shared_dtype))
    out_specs.append(pl.BlockSpec((TB, HDP), lambda i: (i, 0)))         # heads slab (lane-dense)
    out_shape.append(jax.ShapeDtypeStruct((Bp, HDP), heads_dtype))

    outs = pl.pallas_call(
        kernel,
        grid=grid,
        in_specs=[
            pl.BlockSpec((TB, obs_dim), lambda i: (i, 0)),   # obs: tiled over batch
            wspec((obs_dim, HP)),                            # w1
            wspec((1, HP)),                                  # b1
            wspec((HP, HP)),                                 # w2
            wspec((1, HP)),                                  # b2
            wspec((HP, HDP)),                                # fused head weights
            wspec((1, HDP)),                                 # fused head biases
        ],
        out_specs=out_specs,
        out_shape=out_shape,
        compiler_params=pltpu.CompilerParams(
            dimension_semantics=("parallel",)),              # shard batch tiles across TCs
        cost_estimate=pl.CostEstimate(
            flops=flops, transcendentals=transcendentals, bytes_accessed=bytes_accessed),
    )(obs_p, w1_p, b1_p, w2_p, b2_p, wh_p, bh_p)

    if include_shared:
        shared_p, heads_p = outs
    else:
        (heads_p,) = outs

    policy_mean = heads_p[:B, :action_dim]            # already tanh'd in-kernel
    value = heads_p[:B, action_dim]                   # .squeeze(-1) semantics
    aux_value = heads_p[:B, action_dim + 1]
    if include_shared:
        shared = shared_p[:B, :hidden]
        return shared, policy_mean, value, aux_value
    return policy_mean, value, aux_value


def ppg_forward(obs, params, *, action_dim, **kw):
    """Equivalent of PPGAgent.forward (shared_network only)."""
    return ppg_forward_fused(obs, params, action_dim=action_dim, **kw)[0]


def init_linear(key, fan_in, fan_out):
    # Deterministic init mimicking nn.Linear's U(-1/sqrt(fan_in), 1/sqrt(fan_in)).
    kw, kb = jax.random.split(key)
    bound = 1.0 / jnp.sqrt(fan_in)
    w = jax.random.uniform(kw, (fan_in, fan_out), jnp.float32, -bound, bound)
    b = jax.random.uniform(kb, (fan_out,), jnp.float32, -bound, bound)
    return w, b


if __name__ == "__main__":
    # Small shapes consistent with the module: batch=8, obs_dim=16, hidden=64, action_dim=4.
    B, obs_dim, hidden_dim, action_dim = 8, 16, 64, 4

    key = jax.random.PRNGKey(0)
    ks = jax.random.split(key, 6)
    obs = jax.random.normal(ks[0], (B, obs_dim), jnp.float32)
    w1, b1 = init_linear(ks[1], obs_dim, hidden_dim)
    w2, b2 = init_linear(ks[2], hidden_dim, hidden_dim)
    w_pm, b_pm = init_linear(ks[3], hidden_dim, action_dim)
    w_v, b_v = init_linear(ks[4], hidden_dim, 1)
    w_aux, b_aux = init_linear(ks[5], hidden_dim, 1)
    params = (w1, b1, w2, b2, w_pm, b_pm, w_v, b_v, w_aux, b_aux)

    # --- 1. Accuracy-oriented path: f32 activations + f32 outputs, bf16 MXU operands. ---
    shared, pm, value, aux = jax.block_until_ready(
        ppg_forward_fused(obs, params, action_dim=action_dim,
                          act_dtype=jnp.float32, shared_dtype=jnp.float32,
                          heads_dtype=jnp.float32))

    def rt(a):  # round-trip through bf16 (exactly what the kernel feeds to the MXU)
        return a.astype(jnp.bfloat16).astype(jnp.float32)

    h1_ref = jnp.tanh(rt(obs) @ rt(w1) + b1.reshape(1, -1))
    h2_ref = jnp.tanh(rt(h1_ref) @ rt(w2) + b2.reshape(1, -1))
    pm_ref = jnp.tanh(rt(h2_ref) @ rt(w_pm) + b_pm.reshape(1, -1))
    v_ref = (rt(h2_ref) @ rt(w_v) + b_v.reshape(1, -1))[:, 0]
    aux_ref = (rt(h2_ref) @ rt(w_aux) + b_aux.reshape(1, -1))[:, 0]

    assert shared.shape == (B, hidden_dim)
    assert pm.shape == (B, action_dim)
    assert value.shape == (B,) and aux.shape == (B,)
    assert jnp.allclose(shared, h2_ref, atol=1e-4, rtol=1e-4)
    assert jnp.allclose(pm, pm_ref, atol=1e-4, rtol=1e-4)
    assert jnp.allclose(value, v_ref, atol=1e-4, rtol=1e-4)
    assert jnp.allclose(aux, aux_ref, atol=1e-4, rtol=1e-4)

    # --- 2. Default perf path: auto act dtype (bf16 on v6e/v7x), bf16 shared output. ---
    shared_d, pm_d, value_d, aux_d = jax.block_until_ready(
        ppg_forward_fused(obs, params, action_dim=action_dim))

    h2_f32 = jnp.tanh(jnp.tanh(obs @ w1 + b1.reshape(1, -1)) @ w2 + b2.reshape(1, -1))
    pm_f32 = jnp.tanh(h2_f32 @ w_pm + b_pm.reshape(1, -1))
    v_f32 = (h2_f32 @ w_v + b_v.reshape(1, -1))[:, 0]
    aux_f32 = (h2_f32 @ w_aux + b_aux.reshape(1, -1))[:, 0]
    assert jnp.allclose(shared_d.astype(jnp.float32), h2_f32, atol=5e-2, rtol=5e-2)
    assert jnp.allclose(pm_d, pm_f32, atol=5e-2, rtol=5e-2)
    assert jnp.allclose(value_d, v_f32, atol=5e-2, rtol=5e-2)
    assert jnp.allclose(aux_d, aux_f32, atol=5e-2, rtol=5e-2)

    # --- 3. Heads-only fast path (get_action_and_value): shared slab never written to HBM. ---
    pm_h, value_h, aux_h = jax.block_until_ready(
        ppg_forward_fused(obs, params, action_dim=action_dim, include_shared=False))
    assert jnp.allclose(pm_h, pm_d, atol=1e-6)
    assert jnp.allclose(value_h, value_d, atol=1e-6)
    assert jnp.allclose(aux_h, aux_d, atol=1e-6)

    # TODO(synk): torch.distributions.Normal sampling / log_prob / entropy, policy_log_std
    # clamp/exp and the action rescaling in get_action_and_value are stateful-RNG / host-side
    # glue outside forward() and are not implemented as Pallas kernels.

    print("KERNEL_OK")
</pallas_src>

<mosaic_0001>
module attributes {stable_mosaic.version = 11 : i64} {
  func.func @_ppg_fused_kernel(%arg0: i32, %arg1: memref<8x16xf32, #tpu.memory_space<vmem>>, %arg2: memref<16x128xbf16, #tpu.memory_space<vmem>>, %arg3: memref<1x128xf32, #tpu.memory_space<vmem>>, %arg4: memref<128x128xbf16, #tpu.memory_space<vmem>>, %arg5: memref<1x128xf32, #tpu.memory_space<vmem>>, %arg6: memref<128x128xbf16, #tpu.memory_space<vmem>>, %arg7: memref<1x128xf32, #tpu.memory_space<vmem>>, %arg8: memref<8x128xf32, #tpu.memory_space<vmem>>, %arg9: memref<8x128xf32, #tpu.memory_space<vmem>>) attributes {dimension_semantics = [#tpu.dimension_semantics<parallel>], iteration_bounds = array<i64: 1>, scalar_prefetch = 0 : i64, scratch_operands = 0 : i64, tpu.core_type = #tpu.core_type<tc>, window_params = [{transform_indices = @transform_0, window_bounds = array<i64: 8, 16>}, {pipeline_mode = #tpu.pipeline_mode<synchronous>, transform_indices = @transform_1, window_bounds = array<i64: 16, 128>}, {pipeline_mode = #tpu.pipeline_mode<synchronous>, transform_indices = @transform_2, window_bounds = array<i64: 1, 128>}, {pipeline_mode = #tpu.pipeline_mode<synchronous>, transform_indices = @transform_3, window_bounds = array<i64: 128, 128>}, {pipeline_mode = #tpu.pipeline_mode<synchronous>, transform_indices = @transform_4, window_bounds = array<i64: 1, 128>}, {pipeline_mode = #tpu.pipeline_mode<synchronous>, transform_indices = @transform_5, window_bounds = array<i64: 128, 128>}, {pipeline_mode = #tpu.pipeline_mode<synchronous>, transform_indices = @transform_6, window_bounds = array<i64: 1, 128>}, {transform_indices = @transform_7, window_bounds = array<i64: 8, 128>}, {transform_indices = @transform_8, window_bounds = array<i64: 8, 128>}]} {
    %c0 = arith.constant 0 : index
    %c0_0 = arith.constant 0 : index
    %0 = vector.load %arg1[%c0, %c0_0] : memref<8x16xf32, #tpu.memory_space<vmem>>, vector<8x16xf32>
    %1 = arith.truncf %0 : vector<8x16xf32> to vector<8x16xbf16>
    %c0_1 = arith.constant 0 : index
    %c0_2 = arith.constant 0 : index
    %2 = vector.load %arg2[%c0_1, %c0_2] : memref<16x128xbf16, #tpu.memory_space<vmem>>, vector<16x128xbf16>
    %cst = arith.constant dense<0.000000e+00> : vector<8x128xf32>
    %3 = tpu.matmul %1, %2, %cst {dimension_numbers = #tpu.dot_dimension_numbers<[1], [0], [0], [1], [0, 0, 1, 1], [], []>} : vector<8x16xbf16>, vector<16x128xbf16>, vector<8x128xf32> -> vector<8x128xf32>
    %c0_3 = arith.constant 0 : index
    %c0_4 = arith.constant 0 : index
    %4 = vector.load %arg3[%c0_3, %c0_4] : memref<1x128xf32, #tpu.memory_space<vmem>>, vector<1x128xf32>
    %5 = vector.broadcast %4 : vector<1x128xf32> to vector<8x128xf32>
    %6 = arith.addf %3, %5 : vector<8x128xf32>
    %7 = math.tanh %6 : vector<8x128xf32>
    %8 = arith.truncf %7 : vector<8x128xf32> to vector<8x128xbf16>
    %c0_5 = arith.constant 0 : index
    %c0_6 = arith.constant 0 : index
    %9 = vector.load %arg4[%c0_5, %c0_6] : memref<128x128xbf16, #tpu.memory_space<vmem>>, vector<128x128xbf16>
    %cst_7 = arith.constant dense<0.000000e+00> : vector<8x128xf32>
    %10 = tpu.matmul %8, %9, %cst_7 {dimension_numbers = #tpu.dot_dimension_numbers<[1], [0], [0], [1], [0, 0, 1, 1], [], []>} : vector<8x128xbf16>, vector<128x128xbf16>, vector<8x128xf32> -> vector<8x128xf32>
    %c0_8 = arith.constant 0 : index
    %c0_9 = arith.constant 0 : index
    %11 = vector.load %arg5[%c0_8, %c0_9] : memref<1x128xf32, #tpu.memory_space<vmem>>, vector<1x128xf32>
    %12 = vector.broadcast %11 : vector<1x128xf32> to vector<8x128xf32>
    %13 = arith.addf %10, %12 : vector<8x128xf32>
    %14 = math.tanh %13 : vector<8x128xf32>
    %c0_10 = arith.constant 0 : index
    %c0_11 = arith.constant 0 : index
    %15 = vector.load %arg8[%c0_10, %c0_11] : memref<8x128xf32, #tpu.memory_space<vmem>>, vector<8x128xf32>
    tpu.vector_store %arg8[%c0_10, %c0_11], %14 {strides = array<i32>} : memref<8x128xf32, #tpu.memory_space<vmem>>, vector<8x128xf32>,
    %16 = arith.truncf %14 : vector<8x128xf32> to vector<8x128xbf16>
    %c0_12 = arith.constant 0 : index
    %c0_13 = arith.constant 0 : index
    %17 = vector.load %arg6[%c0_12, %c0_13] : memref<128x128xbf16, #tpu.memory_space<vmem>>, vector<128x128xbf16>
    %cst_14 = arith.constant dense<0.000000e+00> : vector<8x128xf32>
    %18 = tpu.matmul %16, %17, %cst_14 {dimension_numbers = #tpu.dot_dimension_numbers<[1], [0], [0], [1], [0, 0, 1, 1], [], []>} : vector<8x128xbf16>, vector<128x128xbf16>, vector<8x128xf32> -> vector<8x128xf32>
    %c0_15 = arith.constant 0 : index
    %c0_16 = arith.constant 0 : index
    %19 = vector.load %arg7[%c0_15, %c0_16] : memref<1x128xf32, #tpu.memory_space<vmem>>, vector<1x128xf32>
    %20 = vector.broadcast %19 : vector<1x128xf32> to vector<8x128xf32>
    %21 = arith.addf %18, %20 : vector<8x128xf32>
    %22 = tpu.iota {dimensions = array<i32: 1>} : vector<1x128xi32>
    %23 = math.tanh %21 : vector<8x128xf32>
    %c4_i32 = arith.constant 4 : i32
    %24 = vector.broadcast %c4_i32 : i32 to vector<1x128xi32>
    %25 = arith.cmpi slt, %22, %24 : vector<1x128xi32>
    %26 = vector.shape_cast %25 : vector<1x128xi1> to vector<1x128xi1>
    %27 = vector.broadcast %26 : vector<1x128xi1> to vector<8x128xi1>
    %28 = arith.select %27, %23, %21 : vector<8x128xi1>, vector<8x128xf32>
    %c0_17 = arith.constant 0 : index
    %c0_18 = arith.constant 0 : index
    %29 = vector.load %arg9[%c0_17, %c0_18] : memref<8x128xf32, #tpu.memory_space<vmem>>, vector<8x128xf32>
    tpu.vector_store %arg9[%c0_17, %c0_18], %28 {strides = array<i32>} : memref<8x128xf32, #tpu.memory_space<vmem>>, vector<8x128xf32>,
    return
  }
  func.func @transform_0(%arg0: i32) -> (i32, i32) {
    %c0_i32 = arith.constant 0 : i32
    %c0_i32_0 = arith.constant 0 : i32
    return %arg0, %c0_i32 : i32, i32
  }
  func.func @transform_1(%arg0: i32) -> (i32, i32) {
    %c0_i32 = arith.constant 0 : i32
    %c0_i32_0 = arith.constant 0 : i32
    %c0_i32_1 = arith.constant 0 : i32
    return %c0_i32, %c0_i32_0 : i32, i32
  }
  func.func @transform_2(%arg0: i32) -> (i32, i32) {
    %c0_i32 = arith.constant 0 : i32
    %c0_i32_0 = arith.constant 0 : i32
    %c0_i32_1 = arith.constant 0 : i32
    return %c0_i32, %c0_i32_0 : i32, i32
  }
  func.func @transform_3(%arg0: i32) -> (i32, i32) {
    %c0_i32 = arith.constant 0 : i32
    %c0_i32_0 = arith.constant 0 : i32
    %c0_i32_1 = arith.constant 0 : i32
    return %c0_i32, %c0_i32_0 : i32, i32
  }
  func.func @transform_4(%arg0: i32) -> (i32, i32) {
    %c0_i32 = arith.constant 0 : i32
    %c0_i32_0 = arith.constant 0 : i32
    %c0_i32_1 = arith.constant 0 : i32
    return %c0_i32, %c0_i32_0 : i32, i32
  }
  func.func @transform_5(%arg0: i32) -> (i32, i32) {
    %c0_i32 = arith.constant 0 : i32
    %c0_i32_0 = arith.constant 0 : i32
    %c0_i32_1 = arith.constant 0 : i32
    return %c0_i32, %c0_i32_0 : i32, i32
  }
  func.func @transform_6(%arg0: i32) -> (i32, i32) {
    %c0_i32 = arith.constant 0 : i32
    %c0_i32_0 = arith.constant 0 : i32
    %c0_i32_1 = arith.constant 0 : i32
    return %c0_i32, %c0_i32_0 : i32, i32
  }
  func.func @transform_7(%arg0: i32) -> (i32, i32) {
    %c0_i32 = arith.constant 0 : i32
    %c0_i32_0 = arith.constant 0 : i32
    return %arg0, %c0_i32 : i32, i32
  }
  func.func @transform_8(%arg0: i32) -> (i32, i32) {
    %c0_i32 = arith.constant 0 : i32
    %c0_i32_0 = arith.constant 0 : i32
    return %arg0, %c0_i32 : i32, i32
  }
}

</mosaic_0001>

<bundles_post_ra>
// kernel: tpu_custom_call.1
= control target key start
LH: loop header
LB: loop body
LE: loop exit
PB: predicated region body
PF: predicated region fallthrough
CT: control target
= control target key end

     0   :  { %14 = vsyncpa [#allocation3], 0  ;;  %s775_s0 = inlined_call_operand.hbm [shape: f32[8,16], index: 0, kind: input, shape index: {}]   ;;  %s776_s1 = inlined_call_operand.hbm [shape: bf16[16,128], index: 1, kind: input, shape index: {}]   ;;  %s777_s2 = inlined_call_operand.vmem [shape: f32[1,128], index: 2, kind: input, shape index: {}]   ;;  %s778_s3 = inlined_call_operand.hbm [shape: bf16[128,128], index: 3, kind: input, shape index: {}]   ;;  %s779_s4 = inlined_call_operand.vmem [shape: f32[1,128], index: 4, kind: input, shape index: {}]   ;;  %s780_s5 = inlined_call_operand.hbm [shape: bf16[128,128], index: 5, kind: input, shape index: {}]   ;;  %s781_s6 = inlined_call_operand.vmem [shape: f32[1,128], index: 6, kind: input, shape index: {}]   ;;  %s782_s7 = inlined_call_operand.hbm [shape: f32[8,128], index: 7, kind: output, shape index: {0}]   ;;  %s783_s8 = inlined_call_operand.hbm [shape: f32[8,128], index: 8, kind: output, shape index: {1}]  }
   0x1   :  { %15 = vsyncpa [#allocation6], 0 }
   0x2   :  { %16 = vsyncpa [#allocation9], 0 }
   0x3   :  { %17 = vsyncpa [#allocation4], 0 }
   0x4   :  { %18 = vsyncpa [#allocation12], 0  ;;  %s661_s27 = smov [#allocation5]  }
   0x5   :  { %s34_s28 = sshll.u32 %s661_s27, 4  ;;  %s35_s28 = int_to_ptr.vmem [resolvable:$true] %s34_s28 }
   0x6   :  { %s539_s29 = scalar_lea.vmem %s35_s28, 128  ;;  %p544_p1 = scmp.lt.s32.totalorder %s35_s28, %s35_s28 }
   0x7   :  { %p540_p0 = scmp.ne.s32.totalorder %s35_s28, %s539_s29  ;;  %p545_p2 = scmp.lt.s32.totalorder %s539_s29, %s539_s29 }
   0x9   :  { %p546_p3 = por %p545_p2, %p544_p1 }
   0xb   :  { %p547_p4 = pnand %p546_p3, %p540_p0 }
   0xd   :  { %550 = shalt.err (!%p547_p4)
}
   0xe   :  { %s662_s30 = smov 64   ;;  %s663_s9 = smov 4  }
   0xf   :  { %40 = dma.hbm_to_vmem [thread:$0]  %s776_s1, 128, %s35_s28, [#allocation6], %s662_s30, %s662_s30, %s663_s9  }
  0x10   :  { %s664_s12 = smov [#allocation2]   ;;  %s665_s14 = smov [#allocation7]  }
  0x11   :  { %s25_s13 = sshll.u32 %s664_s12, 4  ;;  %s48_s15 = sshll.u32 %s665_s14, 4  ;;  %s26_s13 = int_to_ptr.vmem [resolvable:$true] %s25_s13  ;;  %s49_s15 = int_to_ptr.vmem [resolvable:$true] %s48_s15 }
  0x12   :  { %s559_s16 = scalar_lea.vmem %s26_s13, 128  ;;  %p564_p6 = scmp.lt.s32.totalorder %s26_s13, %s26_s13 }
  0x13   :  { %p560_p5 = scmp.ne.s32.totalorder %s26_s13, %s559_s16  ;;  %p565_p7 = scmp.lt.s32.totalorder %s559_s16, %s559_s16 }
  0x15   :  { %p566_p8 = por %p565_p7, %p564_p6 }
  0x17   :  { %p567_p9 = pnand %p566_p8, %p560_p5 }
  0x19   :  { %570 = shalt.err (!%p567_p9)
}
  0x1a   :  { %28 = dma.hbm_to_vmem [thread:$0]  %s775_s0, 128, %s26_s13, [#allocation3]  }
  0x1b   :  { %s579_s19 = scalar_lea.vmem %s49_s15, 1024  ;;  %p584_p11 = scmp.lt.s32.totalorder %s49_s15, %s49_s15 }
  0x1c   :  { %p580_p10 = scmp.ne.s32.totalorder %s49_s15, %s579_s19  ;;  %p585_p12 = scmp.lt.s32.totalorder %s579_s19, %s579_s19 }
  0x1e   :  { %p586_p13 = por %p585_p12, %p584_p11 }
  0x20   :  { %p587_p0 = pnand %p586_p13, %p580_p10 }
  0x22   :  { %590 = shalt.err (!%p587_p0)
}
  0x23   :  { %54 = dma.hbm_to_vmem [thread:$0]  %s778_s3, 1024, %s49_s15, [#allocation6], %s662_s30, %s662_s30, %s663_s9  }
  0x24   :  { %s666_s21 = smov [#allocation8]  }
  0x25   :  { %s62_s22 = sshll.u32 %s666_s21, 4  ;;  %s63_s22 = int_to_ptr.vmem [resolvable:$true] %s62_s22 }
  0x26   :  { %s599_s23 = scalar_lea.vmem %s63_s22, 1024  ;;  %p604_p2 = scmp.lt.s32.totalorder %s63_s22, %s63_s22 }
  0x27   :  { %p600_p1 = scmp.ne.s32.totalorder %s63_s22, %s599_s23  ;;  %p605_p3 = scmp.lt.s32.totalorder %s599_s23, %s599_s23 }
  0x29   :  { %p606_p4 = por %p605_p3, %p604_p2 }
  0x2b   :  { %p607_p5 = pnand %p606_p4, %p600_p1 }
  0x2d   :  { %610 = shalt.err (!%p607_p5)
}
  0x2e   :  { %68 = dma.hbm_to_vmem [thread:$0]  %s780_s5, 1024, %s63_s22, [#allocation9], %s662_s30, %s662_s30, %s663_s9  }
  0x2f   :  { %651 = dma.done.wait [#allocation3], 128  }
  0x30   :  { %652 = vsyncadd [#allocation3], 4294967168 }
  0x31   :  { %653 = dma.done.wait [#allocation6], 1152  }
  0x32   :  { %654 = vsyncadd [#allocation6], 4294966144 }
  0x33   :  { %655 = dma.done.wait [#allocation9], 1024  }
  0x34   :  { %656 = vsyncadd [#allocation9], 4294966272  ;;  %v667_v0 = vmov 0.0   ;;  %vm668_vm0 = vmmov 0   ;;  %v508_v1 = vld [vmem:[#allocation5] sm:$0xff]   ;;  %v84_v2 = vld [vmem:[#allocation2] sm:$0xff] }
  0x35   :  { %452 = vmatprep.subr.bf16.mxu0 %v667_v0  ;;  %454 = vmatprep.mubr.msk.bf16.mxu0 %vm668_vm0, %v667_v0  ;;  %v85_v3 = vpack.c.bf16 %v84_v2, %v84_v2  ;;  %vm101_vm1 = vcmask 130048   ;;  %v509_v4 = vld [vmem:[#allocation7 + $0x38] sm:$0xff]   ;;  %v510_v5 = vld [vmem:[#allocation7 + $0x30] sm:$0xff]   ;;  %v511_v6 = vld [vmem:[#allocation7 + $0x28] sm:$0xff]   ;;  %s669_s26 = smov [#allocation10]  }
  0x36   :  { %458 = vmatprep.subr.bf16.mxu1 %v667_v0  ;;  %474 = vmatprep.mubr.msk.bf16.mxu1 %vm668_vm0, %v667_v0  ;;  %v512_v7 = vld [vmem:[#allocation7 + $0x20] sm:$0xff]   ;;  %v513_v8 = vld [vmem:[#allocation7 + $0x18] sm:$0xff]   ;;  %v514_v9 = vld [vmem:[#allocation7 + $0x10] sm:$0xff]   ;;  %s386_s27 = sshll.u32 %s669_s26, 4  ;;  %s387_s27 = int_to_ptr.vmem [resolvable:$true] %s386_s27 }
  0x37   :  { %453 = vmatpush3.bf16.msra.mxu0 %v508_v1  ;;  %459 = vmatpush3.bf16.msra.mxu1 %v509_v4  ;;  %v515_v10 = vld [vmem:[#allocation7 + $0x8] sm:$0xff]   ;;  %v516_v11 = vld [vmem:[#allocation7] sm:$0xff]   ;;  %v517_v12 = vld [vmem:[#allocation8 + $0x38] sm:$0xff]   ;;  %s611_s28 = scalar_lea.vmem %s387_s27, 128  ;;  %p616_p7 = scmp.lt.s32.totalorder %s387_s27, %s387_s27 }
  0x38   :  { %478 = vmatprep.subr.bf16.mxu0 %v667_v0  ;;  %460 = vmatprep.subr.bf16.mxu1 %v667_v0  ;;  %v518_v13 = vld [vmem:[#allocation8 + $0x30] sm:$0xff]   ;;  %v519_v14 = vld [vmem:[#allocation8 + $0x28] sm:$0xff]   ;;  %v520_v23 = vld [vmem:[#allocation8 + $0x20] sm:$0xff]   ;;  %p612_p6 = scmp.ne.s32.totalorder %s387_s27, %s611_s28  ;;  %p617_p8 = scmp.lt.s32.totalorder %s611_s28, %s611_s28 }
  0x39   :  { %v411_v15 = vld [vmem:[%s777_s2] ss:$0 sm:$0xff]  ;;  %v521_v24 = vld [vmem:[#allocation8 + $0x18] sm:$0xff]   ;;  %v523_v26 = vld [vmem:[#allocation8 + $0x8] sm:$0xff]  }
  0x3a   :  { %455 = vmatmul.mubr.msk.bf16.vlgmr.msra.gmra.mxu0 %vm101_vm1, %v85_v3  ;;  %v522_v25 = vld [vmem:[#allocation8 + $0x10] sm:$0xff]   ;;  %v524_v27 = vld [vmem:[#allocation8] sm:$0xff]   ;;  %p618_p9 = por %p617_p8, %p616_p7 }
  0x3b   :  { %494 = vmatprep.mubr.msk.bf16.mxu0 %vm668_vm0, %v667_v0  ;;  %461 = vmatpush3.bf16.msra.mxu1 %v510_v5  ;;  %v414_v28 = vld [vmem:[%s779_s4] ss:$0 sm:$0xff] }
  0x3c   :  { %462 = vmatprep.subr.bf16.mxu1 %v667_v0  ;;  %479 = vmatpush3.bf16.msra.mxu0 %v517_v12  ;;  %p619_p10 = pnand %p618_p9, %p612_p6 }
  0x3d   :  { %480 = vmatprep.subr.bf16.mxu0 %v667_v0 }
  0x3f   :  { %463 = vmatpush3.bf16.msra.mxu1 %v511_v6 }
  0x40   :  { %464 = vmatprep.subr.bf16.mxu1 %v667_v0  ;;  %481 = vmatpush3.bf16.msra.mxu0 %v518_v13 }
  0x41   :  { %482 = vmatprep.subr.bf16.mxu0 %v667_v0 }
  0x43   :  { %465 = vmatpush3.bf16.msra.mxu1 %v512_v7 }
  0x44   :  { %466 = vmatprep.subr.bf16.mxu1 %v667_v0  ;;  %483 = vmatpush3.bf16.msra.mxu0 %v519_v14 }
  0x45   :  { %484 = vmatprep.subr.bf16.mxu0 %v667_v0 }
  0x47   :  { %467 = vmatpush3.bf16.msra.mxu1 %v513_v8 }
  0x48   :  { %468 = vmatprep.subr.bf16.mxu1 %v667_v0  ;;  %485 = vmatpush3.bf16.msra.mxu0 %v520_v23 }
  0x49   :  { %486 = vmatprep.subr.bf16.mxu0 %v667_v0 }
  0x4b   :  { %469 = vmatpush3.bf16.msra.mxu1 %v514_v9 }
  0x4c   :  { %470 = vmatprep.subr.bf16.mxu1 %v667_v0  ;;  %487 = vmatpush3.bf16.msra.mxu0 %v521_v24 }
  0x4d   :  { %488 = vmatprep.subr.bf16.mxu0 %v667_v0 }
  0x4f   :  { %471 = vmatpush3.bf16.msra.mxu1 %v515_v10 }
  0x50   :  { %472 = vmatprep.subr.bf16.mxu1 %v667_v0  ;;  %489 = vmatpush3.bf16.msra.mxu0 %v522_v25 }
  0x51   :  { %490 = vmatprep.subr.bf16.mxu0 %v667_v0 }
  0x53   :  { %473 = vmatpush3.bf16.msra.mxu1 %v516_v11 }
  0x54   :  { %491 = vmatpush3.bf16.msra.mxu0 %v523_v26 }
  0x55   :  { %492 = vmatprep.subr.bf16.mxu0 %v667_v0 }
  0x58   :  { %493 = vmatpush3.bf16.msra.mxu0 %v524_v27 }
  0xfa   :  { %v139_v16 = vpop.f32.mrf.mxu0 }
  0xfb   :  { %v140_v17 = vadd.f32 %v411_v15, %v139_v16 }
  0xfc   :  { %v456_v18 = vpop.f32.mrf.mxu0 }
  0xfd   :  { %525 = vtanh.f32 %v140_v17 }
  0xfe   :  { %v142_v19 = vpop.f32.mrf.mxu0 }
 0x100   :  { %v457_v20 = vpop.f32.mrf.mxu0 }
 0x10a   :  { %v526_v21 = vpop.eup %525 }
 0x10b   :  { %v146_v22 = vpack.c.bf16 %v526_v21, %v526_v21 }
 0x10d   :  { %475 = vmatmul.mubr.bf16.vlgmr.msra.gmra.mxu1 %v146_v22 }
 0x1cd   :  { %v252_v29 = vpop.f32.mrf.mxu1 }
 0x1ce   :  { %v253_v30 = vadd.f32 %v414_v28, %v252_v29 }
 0x1cf   :  { %v476_v31 = vpop.f32.mrf.mxu1 }
 0x1d0   :  { %527 = vtanh.f32 %v253_v30 }
 0x1d1   :  { %v255_v32 = vpop.f32.mrf.mxu1 }
 0x1d3   :  { %v477_v33 = vpop.f32.mrf.mxu1 }
 0x1dd   :  { %v528_v34 = vpop.eup %527 }
 0x1de   :  { %259 = vst [vmem:[#allocation10] sm:$0xff] %v528_v34  ;;  %v260_v35 = vpack.c.bf16 %v528_v34, %v528_v34 }
 0x1e0   :  { %495 = vmatmul.mubr.bf16.vlgmr.msra.gmra.mxu0 %v260_v35 }
 0x1e1   :  { %622 = shalt.err (!%p619_p10)
}
 0x1e2   :  { %389 = dma.vmem_to_hbm [thread:$0]  %s387_s27, 128, %s782_s7, [#allocation4]   ;;  %v423_v36 = vld [vmem:[%s781_s6] ss:$0 sm:$0xff]  ;;  %v372_v42 = vlaneseq }
 0x1e3   :  { %s670_s10 = smov [#allocation11]  }
 0x1e4   :  { %v373_v43 = vand.u32 127, %v372_v42  ;;  %s396_s11 = sshll.u32 %s670_s10, 4  ;;  %s397_s11 = int_to_ptr.vmem [resolvable:$true] %s396_s11 }
 0x1e5   :  { %s631_s7 = scalar_lea.vmem %s397_s11, 128  ;;  %p636_p12 = scmp.lt.s32.totalorder %s397_s11, %s397_s11 }
 0x1e6   :  { %vm375_vm2 = vcmp.lt.s32.totalorder %v373_v43, 4  ;;  %p632_p11 = scmp.ne.s32.totalorder %s397_s11, %s631_s7  ;;  %p637_p13 = scmp.lt.s32.totalorder %s631_s7, %s631_s7 }
 0x1e8   :  { %p638_p0 = por %p637_p13, %p636_p12 }
 0x1ea   :  { %p639_p1 = pnand %p638_p0, %p632_p11 }
 0x2a0   :  { %v366_v37 = vpop.f32.mrf.mxu0 }
 0x2a1   :  { %v367_v38 = vadd.f32 %v423_v36, %v366_v37 }
 0x2a2   :  { %v496_v39 = vpop.f32.mrf.mxu0 }
 0x2a3   :  { %529 = vtanh.f32 %v367_v38 }
 0x2a4   :  { %v369_v40 = vpop.f32.mrf.mxu0 }
 0x2a6   :  { %v497_v41 = vpop.f32.mrf.mxu0 }
 0x2b0   :  { %v530_v44 = vpop.eup %529 }
 0x2b1   :  { %v378_v45 = vsel %vm375_vm2, %v530_v44, %v367_v38 }
 0x2b2   :  { %379 = vst [vmem:[#allocation11] sm:$0xff] %v378_v45 }
 0x2b3   :  { %642 = shalt.err (!%p639_p1)
}
 0x2b4   :  { %399 = dma.vmem_to_hbm [thread:$0]  %s397_s11, 128, %s783_s8, [#allocation12]  }
 0x2b5   :  { %657 = dma.done.wait [#allocation4], 128  }
 0x2b6   :  { %658 = vsyncadd [#allocation4], 4294967168 }
 0x2b7   :  { %659 = dma.done.wait [#allocation12], 128  }
 0x2b8   :  { %660 = vsyncadd [#allocation12], 4294967168 }
 0x2b9   :  { %406 = vsyncpa [#allocation3], 1 }
 0x2ba   :  { %407 = vsyncpa [#allocation6], 1 }
 0x2bb   :  { %408 = vsyncpa [#allocation9], 1 }
 0x2bc   :  { %409 = vsyncpa [#allocation4], 1 }
 0x2bd   :  { %410 = vsyncpa [#allocation12], 1 }

</bundles_post_ra>
